<compile_context>
chip_gen: v6e
topology: v6e:2x2x1
jax: 0.10.0
libtpu: 0.0.40
codegen_flags: <defaults>
</compile_context>

<pallas_src>
import functools

import jax
import jax.numpy as jnp
from jax import lax
from jax.experimental import pallas as pl
from jax.experimental.pallas import tpu as pltpu

MIN_NORM = 1e-15     # hgcn Hyperboloid.min_norm
EPS_F32 = 4e-3       # hgcn Hyperboloid.eps[float32]
TANH_CLAMP = 15.0    # hgcn cosh/sinh input clamp


def _hypagg_kernel(x_ref, adj_ref, o_ref, h_a, h_b, acc_s, mm_acc, *, c):
    """Grid = (gcn layer l, row tile i, k tile k); all axes sequential.

    Everything node-feature shaped is transposed: x_ref (D, T), o_ref (D, T),
    h_a/h_b/acc_s (nb, D, T), mm_acc (D, T).  Layer l reads h_l from the
    even/odd ping-pong buffer and writes h_{l+1} to the other one; h_0 =
    logmap0(x)^T is materialised into h_a during the (l==0, i==0) k-sweep.
    acc_s accumulates sum_{l>=1} h_l (resSumGCN); the expmap0+proj epilogue
    runs once per row tile at the last layer.
    """
    l = pl.program_id(0)
    i = pl.program_id(1)
    k = pl.program_id(2)
    nk = pl.num_programs(2)
    n_gcn = pl.num_programs(0)

    D, _ = mm_acc.shape
    K = 1.0 / c
    sqrtK = K ** 0.5

    # (D, 1) masks; sublane 0 = hyperboloid time coordinate.
    row = lax.broadcasted_iota(jnp.int32, (D, 1), 0)
    sp_mask = (row > 0).astype(jnp.float32)
    t_mask = 1.0 - sp_mask

    l_even = lax.rem(l, 2) == 0

    # ---- logmap0: materialise h_0 = logmap0(x)^T, one lane tile per k -------
    @pl.when(jnp.logical_and(l == 0, i == 0))
    def _():
        xk = x_ref[...].astype(jnp.float32)                         # (D, T)
        y = xk * sp_mask
        y_norm = jnp.maximum(
            jnp.sqrt(jnp.sum(y * y, axis=0, keepdims=True)), MIN_NORM)
        theta = jnp.maximum(xk[0:1, :] / sqrtK, 1.0 + EPS_F32)
        arcosh = jnp.log(theta + jnp.sqrt(theta * theta - 1.0))
        h_a[k] = ((sqrtK * arcosh / y_norm) * y).astype(h_a.dtype)  # row 0 == 0

    # ---- one (D,T) += (D,Tk) x (Tm,Tk)^T MXU step of h_{l+1} = adj @ h_l ----
    @pl.when(k == 0)
    def _():
        mm_acc[...] = jnp.zeros_like(mm_acc)

    def mxu_step(h_buf):
        h_in = h_buf[k]                                             # (D, T) bf16
        mm_acc[...] += lax.dot_general(
            h_in, adj_ref[...],
            dimension_numbers=(((1,), (1,)), ((), ())),
            preferred_element_type=jnp.float32)

    @pl.when(l_even)
    def _():
        mxu_step(h_a)

    @pl.when(jnp.logical_not(l_even))
    def _():
        mxu_step(h_b)

    # ---- row tile of h_{l+1} finished: stash, accumulate, maybe finalize ----
    @pl.when(k == nk - 1)
    def _():
        h_new = mm_acc[...]                                         # (D, T) f32

        # Ping-pong stash (only needed if another propagation layer follows).
        @pl.when(l < n_gcn - 1)
        def _():
            @pl.when(l_even)
            def _():
                h_b[i] = h_new.astype(h_b.dtype)

            @pl.when(jnp.logical_not(l_even))
            def _():
                h_a[i] = h_new.astype(h_a.dtype)

        # resSumGCN accumulator (f32).
        @pl.when(l == 0)
        def _():
            acc_s[i] = h_new

        @pl.when(l > 0)
        def _():
            acc_s[i] = acc_s[i] + h_new

        # expmap0 + proj epilogue (last GCN layer only).
        @pl.when(l == n_gcn - 1)
        def _():
            u = acc_s[i]                                            # (D, T)
            u_sp = u * sp_mask
            u_norm = jnp.maximum(
                jnp.sqrt(jnp.sum(u_sp * u_sp, axis=0, keepdims=True)), MIN_NORM)
            th = jnp.minimum(u_norm / sqrtK, TANH_CLAMP)            # th >= 0
            sinh_th = 0.5 * (jnp.exp(th) - jnp.exp(-th))            # exact exps
            res_sp = (sqrtK * sinh_th / u_norm) * u_sp
            # proj(): time coordinate recomputed from the spatial part; this
            # makes expmap0's cosh time coordinate and the second (idempotent)
            # proj of the reference code redundant.
            sq = jnp.sum(res_sp * res_sp, axis=0, keepdims=True)
            z0 = jnp.sqrt(jnp.maximum(K + sq, EPS_F32))
            o_ref[...] = (res_sp + z0 * t_mask).astype(o_ref.dtype)


def _vmem_capacity_bytes():
    try:
        info = pltpu.get_tpu_info()
        return int(getattr(info, "vmem_capacity_bytes", 64 * 1024 * 1024))
    except Exception:
        return 64 * 1024 * 1024        # conservative (v7x physical VMEM)


def hyp_agg(x, adj, *, c=1.0, num_layers=3, block_size=1024,
            adj_dtype=jnp.bfloat16):
    """HypAgg.forward(x, adj) with Hyperboloid manifold and resSumGCN."""
    N, D = x.shape
    assert adj.shape == (N, N)
    assert num_layers >= 2, "resSumGCN needs at least one propagation step"
    n_gcn = num_layers - 1

    T = min(block_size, N)
    assert N % T == 0 and T % 128 == 0, "N must be a multiple of the tile size"
    nb = N // T

    x_t = jnp.asarray(x, jnp.float32).T          # (D, N): features on sublanes
    adj_in = adj.astype(adj_dtype)               # adj bytes dominate HBM traffic
    adj_bytes = jnp.dtype(adj_dtype).itemsize

    kernel = functools.partial(_hypagg_kernel, c=float(c))

    # x is only consumed while h_0 = logmap0(x) is materialised (l==0, i==0);
    # pin its block index afterwards so the pipeline stops fetching it.
    def x_map(l, i, k):
        first = jnp.logical_and(l == 0, i == 0)
        return (0, jnp.where(first, k, nb - 1))

    # Pin the output block until the last layer so no uninitialized block is
    # ever written back to HBM and writeback happens exactly once per row tile.
    def o_map(l, i, k):
        return (0, jnp.where(l == n_gcn - 1, i, 0))

    def _rup(a, b):
        return -(-a // b) * b

    d_f32 = _rup(D, 8)
    d_b16 = _rup(D, 16)
    vmem_need = (
        2 * T * T * adj_bytes                    # double-buffered adj tiles
        + 2 * d_f32 * T * 4                      # double-buffered x_t tiles
        + 2 * d_f32 * T * 4                      # double-buffered out tiles
        + 2 * nb * d_b16 * T * 2                 # h_a + h_b (bf16)
        + nb * d_f32 * T * 4                     # acc_s (f32)
        + d_f32 * T * 4                          # mm_acc
        + (2 << 20)                              # slack
    )
    cap = _vmem_capacity_bytes()                 # 128 MiB v5e/v6e, 64 MiB v7x
    vmem_limit = int(min(max(vmem_need, 32 << 20), cap - (8 << 20)))

    grid_spec = pltpu.PrefetchScalarGridSpec(
        num_scalar_prefetch=0,
        grid=(n_gcn, nb, nb),
        in_specs=[
            pl.BlockSpec((D, T), x_map),                       # x^T lane tile
            pl.BlockSpec((T, T), lambda l, i, k: (i, k)),      # adj tile
        ],
        out_specs=pl.BlockSpec((D, T), o_map),
        scratch_shapes=[
            pltpu.VMEM((nb, D, T), jnp.bfloat16),   # h ping-pong A (holds x_tangent at l=0)
            pltpu.VMEM((nb, D, T), jnp.bfloat16),   # h ping-pong B
            pltpu.VMEM((nb, D, T), jnp.float32),    # acc_s (resSum accumulator)
            pltpu.VMEM((D, T), jnp.float32),        # mm_acc (per-row-tile matmul acc)
        ],
    )

    out_t = pl.pallas_call(
        kernel,
        out_shape=jax.ShapeDtypeStruct((D, N), jnp.float32),
        grid_spec=grid_spec,
        compiler_params=pltpu.CompilerParams(
            # Row axis must stay "arbitrary": h_{l+1} needs the FULL h_l held
            # in (single-core) VMEM scratch, so megacore row sharding would
            # race on the layer recurrence (see TODO above).
            dimension_semantics=("arbitrary", "arbitrary", "arbitrary"),
            vmem_limit_bytes=vmem_limit,
        ),
        cost_estimate=pl.CostEstimate(
            flops=2 * n_gcn * N * N * D,
            transcendentals=4 * N,
            bytes_accessed=n_gcn * N * N * adj_bytes + 3 * N * D * 4,
        ),
    )(x_t, adj_in)

    return out_t.T.astype(x.dtype)


def _reference(x, adj, *, c=1.0, num_layers=3):
    """Pure-JAX f32 reference mirroring the PyTorch/hgcn math."""
    K = 1.0 / c
    sqrtK = K ** 0.5
    y = x[:, 1:]
    y_norm = jnp.maximum(jnp.linalg.norm(y, axis=-1, keepdims=True), MIN_NORM)
    theta = jnp.maximum(x[:, :1] / sqrtK, 1.0 + EPS_F32)
    arcosh = jnp.log(theta + jnp.sqrt(theta * theta - 1.0))
    xt = jnp.concatenate([jnp.zeros_like(x[:, :1]), sqrtK * arcosh * y / y_norm], -1)
    h, acc = xt, jnp.zeros_like(xt)
    for _ in range(num_layers - 1):
        h = adj @ h
        acc = acc + h
    u_sp = acc[:, 1:]
    u_norm = jnp.maximum(jnp.linalg.norm(u_sp, axis=-1, keepdims=True), MIN_NORM)
    th = jnp.clip(u_norm / sqrtK, -TANH_CLAMP, TANH_CLAMP)
    res = jnp.concatenate(
        [sqrtK * jnp.cosh(th), sqrtK * jnp.sinh(th) * u_sp / u_norm], -1)

    def proj(z):
        sq = jnp.sum(z[:, 1:] ** 2, axis=-1, keepdims=True)
        z0 = jnp.sqrt(jnp.maximum(K + sq, EPS_F32))
        return jnp.concatenate([z0, z[:, 1:]], -1)

    return proj(proj(res))


if __name__ == "__main__":
    key = jax.random.PRNGKey(0)
    k_x, k_a = jax.random.split(key)

    N, D = 512, 16          # 512 graph nodes, hyperboloid dimension 16
    c = 1.0
    num_layers = 3          # -> 2 GCN propagation steps (resSumGCN)

    # Valid hyperboloid points: random spatial part, time coord = sqrt(K + ||sp||^2).
    spatial = 0.1 * jax.random.normal(k_x, (N, D - 1), dtype=jnp.float32)
    x0 = jnp.sqrt(1.0 / c + jnp.sum(spatial ** 2, axis=-1, keepdims=True))
    x = jnp.concatenate([x0, spatial], axis=-1)

    # Dense row-stochastic adjacency (stand-in for the sparse normalized adj).
    a = jax.random.uniform(k_a, (N, N), dtype=jnp.float32)
    adj = a / jnp.sum(a, axis=-1, keepdims=True)

    # Small tile so the demo exercises a multi-tile grid: (2, 4, 4).
    out = hyp_agg(x, adj, c=c, num_layers=num_layers, block_size=128)
    out = jax.block_until_ready(out)

    # Compare against the true f32 reference with an explicit error budget
    # covering the intended bf16 quantization of adj and the h recurrence.
    ref = _reference(x, adj, c=c, num_layers=num_layers)

    assert out.shape == (N, D)
    max_err = float(jnp.max(jnp.abs(out - ref)))
    assert max_err < 1.5e-3, f"mismatch vs reference: max abs err {max_err}"
    print("KERNEL_OK")
</pallas_src>

<mosaic_0001>
module attributes {stable_mosaic.version = 11 : i64} {
  func.func @_hypagg_kernel(%arg0: i32, %arg1: i32, %arg2: i32, %arg3: memref<16x128xf32, #tpu.memory_space<vmem>>, %arg4: memref<128x128xbf16, #tpu.memory_space<vmem>>, %arg5: memref<16x128xf32, #tpu.memory_space<vmem>>, %arg6: memref<4x16x128xbf16, #tpu.memory_space<vmem>>, %arg7: memref<4x16x128xbf16, #tpu.memory_space<vmem>>, %arg8: memref<4x16x128xf32, #tpu.memory_space<vmem>>, %arg9: memref<16x128xf32, #tpu.memory_space<vmem>>) attributes {dimension_semantics = [#tpu.dimension_semantics<arbitrary>, #tpu.dimension_semantics<arbitrary>, #tpu.dimension_semantics<arbitrary>], iteration_bounds = array<i64: 2, 4, 4>, scalar_prefetch = 0 : i64, scratch_operands = 4 : i64, tpu.core_type = #tpu.core_type<tc>, window_params = [{transform_indices = @transform_0, window_bounds = array<i64: 16, 128>}, {transform_indices = @transform_1, window_bounds = array<i64: 128, 128>}, {transform_indices = @transform_2, window_bounds = array<i64: 16, 128>}]} {
    %0 = tpu.iota {dimensions = array<i32: 0>} : vector<16x1xi32>
    %c0_i32 = arith.constant 0 : i32
    %1 = vector.broadcast %c0_i32 : i32 to vector<16x1xi32>
    %2 = arith.cmpi sgt, %0, %1 : vector<16x1xi32>
    %3 = arith.extui %2 : vector<16x1xi1> to vector<16x1xi32>
    %4 = arith.sitofp %3 : vector<16x1xi32> to vector<16x1xf32>
    %cst = arith.constant 1.000000e+00 : f32
    %5 = vector.broadcast %cst : f32 to vector<16x1xf32>
    %6 = arith.subf %5, %4 : vector<16x1xf32>
    %c2_i32 = arith.constant 2 : i32
    %7 = arith.remsi %arg0, %c2_i32 : i32
    %c0_i32_0 = arith.constant 0 : i32
    %8 = arith.cmpi eq, %7, %c0_i32_0 : i32
    %c0_i32_1 = arith.constant 0 : i32
    %9 = arith.cmpi eq, %arg0, %c0_i32_1 : i32
    %c0_i32_2 = arith.constant 0 : i32
    %10 = arith.cmpi eq, %arg1, %c0_i32_2 : i32
    %11 = arith.andi %9, %10 : i1
    %12 = arith.extui %11 : i1 to i32
    %c0_i32_3 = arith.constant 0 : i32
    %13 = arith.cmpi ne, %12, %c0_i32_3 : i32
    scf.if %13 {
      %c0 = arith.constant 0 : index
      %c0_9 = arith.constant 0 : index
      %25 = vector.load %arg3[%c0, %c0_9] : memref<16x128xf32, #tpu.memory_space<vmem>>, vector<16x128xf32>
      %26 = vector.broadcast %4 : vector<16x1xf32> to vector<16x128xf32>
      %27 = arith.mulf %25, %26 : vector<16x128xf32>
      %28 = arith.mulf %27, %27 : vector<16x128xf32>
      %cst_10 = arith.constant dense<0.000000e+00> : vector<128xf32>
      %29 = vector.multi_reduction <add>, %28, %cst_10 [0] : vector<16x128xf32> to vector<128xf32>
      %30 = vector.shape_cast %29 : vector<128xf32> to vector<1x128xf32>
      %31 = math.sqrt %30 : vector<1x128xf32>
      %cst_11 = arith.constant 1.000000e-15 : f32
      %32 = vector.broadcast %cst_11 : f32 to vector<1x128xf32>
      %33 = arith.maximumf %31, %32 : vector<1x128xf32>
      %34 = vector.extract_strided_slice %25 {offsets = [0, 0], sizes = [1, 128], strides = [1, 1]} : vector<16x128xf32> to vector<1x128xf32>
      %cst_12 = arith.constant 1.000000e+00 : f32
      %35 = vector.broadcast %cst_12 : f32 to vector<1x128xf32>
      %36 = arith.divf %34, %35 : vector<1x128xf32>
      %cst_13 = arith.constant 1.004000e+00 : f32
      %37 = vector.broadcast %cst_13 : f32 to vector<1x128xf32>
      %38 = arith.maximumf %36, %37 : vector<1x128xf32>
      %39 = arith.mulf %38, %38 : vector<1x128xf32>
      %cst_14 = arith.constant 1.000000e+00 : f32
      %40 = vector.broadcast %cst_14 : f32 to vector<1x128xf32>
      %41 = arith.subf %39, %40 : vector<1x128xf32>
      %42 = math.sqrt %41 : vector<1x128xf32>
      %43 = arith.addf %38, %42 : vector<1x128xf32>
      %44 = math.log %43 : vector<1x128xf32>
      %cst_15 = arith.constant 1.000000e+00 : f32
      %45 = vector.broadcast %cst_15 : f32 to vector<1x128xf32>
      %46 = arith.mulf %45, %44 : vector<1x128xf32>
      %47 = arith.divf %46, %33 : vector<1x128xf32>
      %48 = vector.broadcast %47 : vector<1x128xf32> to vector<16x128xf32>
      %49 = arith.mulf %48, %27 : vector<16x128xf32>
      %50 = arith.truncf %49 : vector<16x128xf32> to vector<16x128xbf16>
      %51 = arith.index_cast %arg2 : i32 to index
      %c0_16 = arith.constant 0 : index
      %c0_17 = arith.constant 0 : index
      %52 = vector.load %arg6[%51, %c0_16, %c0_17] : memref<4x16x128xbf16, #tpu.memory_space<vmem>>, vector<1x16x128xbf16>
      %53 = vector.shape_cast %52 : vector<1x16x128xbf16> to vector<16x128xbf16>
      %54 = vector.shape_cast %50 : vector<16x128xbf16> to vector<1x16x128xbf16>
      tpu.vector_store %arg6[%51, %c0_16, %c0_17], %54 {strides = array<i32>} : memref<4x16x128xbf16, #tpu.memory_space<vmem>>, vector<1x16x128xbf16>,
    } else {
    }
    %c0_i32_4 = arith.constant 0 : i32
    %14 = arith.cmpi eq, %arg2, %c0_i32_4 : i32
    %15 = arith.extui %14 : i1 to i32
    %c0_i32_5 = arith.constant 0 : i32
    %16 = arith.cmpi ne, %15, %c0_i32_5 : i32
    scf.if %16 {
      %cst_9 = arith.constant 0.000000e+00 : f32
      %25 = vector.broadcast %cst_9 : f32 to vector<16x128xf32>
      %c0 = arith.constant 0 : index
      %c0_10 = arith.constant 0 : index
      %26 = vector.load %arg9[%c0, %c0_10] : memref<16x128xf32, #tpu.memory_space<vmem>>, vector<16x128xf32>
      tpu.vector_store %arg9[%c0, %c0_10], %25 {strides = array<i32>} : memref<16x128xf32, #tpu.memory_space<vmem>>, vector<16x128xf32>,
    } else {
    }
    %17 = arith.extui %8 : i1 to i32
    %c0_i32_6 = arith.constant 0 : i32
    %18 = arith.cmpi ne, %17, %c0_i32_6 : i32
    scf.if %18 {
      %25 = arith.index_cast %arg2 : i32 to index
      %c0 = arith.constant 0 : index
      %c0_9 = arith.constant 0 : index
      %26 = vector.load %arg6[%25, %c0, %c0_9] : memref<4x16x128xbf16, #tpu.memory_space<vmem>>, vector<1x16x128xbf16>
      %27 = vector.shape_cast %26 : vector<1x16x128xbf16> to vector<16x128xbf16>
      %c0_10 = arith.constant 0 : index
      %c0_11 = arith.constant 0 : index
      %28 = vector.load %arg9[%c0_10, %c0_11] : memref<16x128xf32, #tpu.memory_space<vmem>>, vector<16x128xf32>
      %c0_12 = arith.constant 0 : index
      %c0_13 = arith.constant 0 : index
      %29 = vector.load %arg4[%c0_12, %c0_13] : memref<128x128xbf16, #tpu.memory_space<vmem>>, vector<128x128xbf16>
      %cst_14 = arith.constant dense<0.000000e+00> : vector<16x128xf32>
      %30 = tpu.matmul %27, %29, %cst_14 {dimension_numbers = #tpu.dot_dimension_numbers<[1], [1], [0], [0], [0, 0, 1, 0], [], []>} : vector<16x128xbf16>, vector<128x128xbf16>, vector<16x128xf32> -> vector<16x128xf32>
      %31 = arith.addf %28, %30 : vector<16x128xf32>
      %c0_15 = arith.constant 0 : index
      %c0_16 = arith.constant 0 : index
      %32 = vector.load %arg9[%c0_15, %c0_16] : memref<16x128xf32, #tpu.memory_space<vmem>>, vector<16x128xf32>
      tpu.vector_store %arg9[%c0_15, %c0_16], %31 {strides = array<i32>} : memref<16x128xf32, #tpu.memory_space<vmem>>, vector<16x128xf32>,
    } else {
    }
    %true = arith.constant true
    %19 = arith.xori %8, %true : i1
    %20 = arith.extui %19 : i1 to i32
    %c0_i32_7 = arith.constant 0 : i32
    %21 = arith.cmpi ne, %20, %c0_i32_7 : i32
    scf.if %21 {
      %25 = arith.index_cast %arg2 : i32 to index
      %c0 = arith.constant 0 : index
      %c0_9 = arith.constant 0 : index
      %26 = vector.load %arg7[%25, %c0, %c0_9] : memref<4x16x128xbf16, #tpu.memory_space<vmem>>, vector<1x16x128xbf16>
      %27 = vector.shape_cast %26 : vector<1x16x128xbf16> to vector<16x128xbf16>
      %c0_10 = arith.constant 0 : index
      %c0_11 = arith.constant 0 : index
      %28 = vector.load %arg9[%c0_10, %c0_11] : memref<16x128xf32, #tpu.memory_space<vmem>>, vector<16x128xf32>
      %c0_12 = arith.constant 0 : index
      %c0_13 = arith.constant 0 : index
      %29 = vector.load %arg4[%c0_12, %c0_13] : memref<128x128xbf16, #tpu.memory_space<vmem>>, vector<128x128xbf16>
      %cst_14 = arith.constant dense<0.000000e+00> : vector<16x128xf32>
      %30 = tpu.matmul %27, %29, %cst_14 {dimension_numbers = #tpu.dot_dimension_numbers<[1], [1], [0], [0], [0, 0, 1, 0], [], []>} : vector<16x128xbf16>, vector<128x128xbf16>, vector<16x128xf32> -> vector<16x128xf32>
      %31 = arith.addf %28, %30 : vector<16x128xf32>
      %c0_15 = arith.constant 0 : index
      %c0_16 = arith.constant 0 : index
      %32 = vector.load %arg9[%c0_15, %c0_16] : memref<16x128xf32, #tpu.memory_space<vmem>>, vector<16x128xf32>
      tpu.vector_store %arg9[%c0_15, %c0_16], %31 {strides = array<i32>} : memref<16x128xf32, #tpu.memory_space<vmem>>, vector<16x128xf32>,
    } else {
    }
    %c3_i32 = arith.constant 3 : i32
    %22 = arith.cmpi eq, %arg2, %c3_i32 : i32
    %23 = arith.extui %22 : i1 to i32
    %c0_i32_8 = arith.constant 0 : i32
    %24 = arith.cmpi ne, %23, %c0_i32_8 : i32
    scf.if %24 {
      %c0 = arith.constant 0 : index
      %c0_9 = arith.constant 0 : index
      %25 = vector.load %arg9[%c0, %c0_9] : memref<16x128xf32, #tpu.memory_space<vmem>>, vector<16x128xf32>
      %c1_i32 = arith.constant 1 : i32
      %26 = arith.cmpi slt, %arg0, %c1_i32 : i32
      %27 = arith.extui %26 : i1 to i32
      %c0_i32_10 = arith.constant 0 : i32
      %28 = arith.cmpi ne, %27, %c0_i32_10 : i32
      scf.if %28 {
        %38 = arith.extui %8 : i1 to i32
        %c0_i32_17 = arith.constant 0 : i32
        %39 = arith.cmpi ne, %38, %c0_i32_17 : i32
        scf.if %39 {
          %43 = arith.truncf %25 : vector<16x128xf32> to vector<16x128xbf16>
          %44 = arith.index_cast %arg1 : i32 to index
          %c0_20 = arith.constant 0 : index
          %c0_21 = arith.constant 0 : index
          %45 = vector.load %arg7[%44, %c0_20, %c0_21] : memref<4x16x128xbf16, #tpu.memory_space<vmem>>, vector<1x16x128xbf16>
          %46 = vector.shape_cast %45 : vector<1x16x128xbf16> to vector<16x128xbf16>
          %47 = vector.shape_cast %43 : vector<16x128xbf16> to vector<1x16x128xbf16>
          tpu.vector_store %arg7[%44, %c0_20, %c0_21], %47 {strides = array<i32>} : memref<4x16x128xbf16, #tpu.memory_space<vmem>>, vector<1x16x128xbf16>,
        } else {
        }
        %true_18 = arith.constant true
        %40 = arith.xori %8, %true_18 : i1
        %41 = arith.extui %40 : i1 to i32
        %c0_i32_19 = arith.constant 0 : i32
        %42 = arith.cmpi ne, %41, %c0_i32_19 : i32
        scf.if %42 {
          %43 = arith.truncf %25 : vector<16x128xf32> to vector<16x128xbf16>
          %44 = arith.index_cast %arg1 : i32 to index
          %c0_20 = arith.constant 0 : index
          %c0_21 = arith.constant 0 : index
          %45 = vector.load %arg6[%44, %c0_20, %c0_21] : memref<4x16x128xbf16, #tpu.memory_space<vmem>>, vector<1x16x128xbf16>
          %46 = vector.shape_cast %45 : vector<1x16x128xbf16> to vector<16x128xbf16>
          %47 = vector.shape_cast %43 : vector<16x128xbf16> to vector<1x16x128xbf16>
          tpu.vector_store %arg6[%44, %c0_20, %c0_21], %47 {strides = array<i32>} : memref<4x16x128xbf16, #tpu.memory_space<vmem>>, vector<1x16x128xbf16>,
        } else {
        }
      } else {
      }
      %c0_i32_11 = arith.constant 0 : i32
      %29 = arith.cmpi eq, %arg0, %c0_i32_11 : i32
      %30 = arith.extui %29 : i1 to i32
      %c0_i32_12 = arith.constant 0 : i32
      %31 = arith.cmpi ne, %30, %c0_i32_12 : i32
      scf.if %31 {
        %38 = arith.index_cast %arg1 : i32 to index
        %c0_17 = arith.constant 0 : index
        %c0_18 = arith.constant 0 : index
        %39 = vector.load %arg8[%38, %c0_17, %c0_18] : memref<4x16x128xf32, #tpu.memory_space<vmem>>, vector<1x16x128xf32>
        %40 = vector.shape_cast %39 : vector<1x16x128xf32> to vector<16x128xf32>
        %41 = vector.shape_cast %25 : vector<16x128xf32> to vector<1x16x128xf32>
        tpu.vector_store %arg8[%38, %c0_17, %c0_18], %41 {strides = array<i32>} : memref<4x16x128xf32, #tpu.memory_space<vmem>>, vector<1x16x128xf32>,
      } else {
      }
      %c0_i32_13 = arith.constant 0 : i32
      %32 = arith.cmpi sgt, %arg0, %c0_i32_13 : i32
      %33 = arith.extui %32 : i1 to i32
      %c0_i32_14 = arith.constant 0 : i32
      %34 = arith.cmpi ne, %33, %c0_i32_14 : i32
      scf.if %34 {
        %38 = arith.index_cast %arg1 : i32 to index
        %c0_17 = arith.constant 0 : index
        %c0_18 = arith.constant 0 : index
        %39 = vector.load %arg8[%38, %c0_17, %c0_18] : memref<4x16x128xf32, #tpu.memory_space<vmem>>, vector<1x16x128xf32>
        %40 = vector.shape_cast %39 : vector<1x16x128xf32> to vector<16x128xf32>
        %41 = arith.addf %40, %25 : vector<16x128xf32>
        %42 = arith.index_cast %arg1 : i32 to index
        %c0_19 = arith.constant 0 : index
        %c0_20 = arith.constant 0 : index
        %43 = vector.load %arg8[%42, %c0_19, %c0_20] : memref<4x16x128xf32, #tpu.memory_space<vmem>>, vector<1x16x128xf32>
        %44 = vector.shape_cast %43 : vector<1x16x128xf32> to vector<16x128xf32>
        %45 = vector.shape_cast %41 : vector<16x128xf32> to vector<1x16x128xf32>
        tpu.vector_store %arg8[%42, %c0_19, %c0_20], %45 {strides = array<i32>} : memref<4x16x128xf32, #tpu.memory_space<vmem>>, vector<1x16x128xf32>,
      } else {
      }
      %c1_i32_15 = arith.constant 1 : i32
      %35 = arith.cmpi eq, %arg0, %c1_i32_15 : i32
      %36 = arith.extui %35 : i1 to i32
      %c0_i32_16 = arith.constant 0 : i32
      %37 = arith.cmpi ne, %36, %c0_i32_16 : i32
      scf.if %37 {
        %38 = arith.index_cast %arg1 : i32 to index
        %c0_17 = arith.constant 0 : index
        %c0_18 = arith.constant 0 : index
        %39 = vector.load %arg8[%38, %c0_17, %c0_18] : memref<4x16x128xf32, #tpu.memory_space<vmem>>, vector<1x16x128xf32>
        %40 = vector.shape_cast %39 : vector<1x16x128xf32> to vector<16x128xf32>
        %41 = vector.broadcast %4 : vector<16x1xf32> to vector<16x128xf32>
        %42 = arith.mulf %40, %41 : vector<16x128xf32>
        %43 = arith.mulf %42, %42 : vector<16x128xf32>
        %cst_19 = arith.constant dense<0.000000e+00> : vector<128xf32>
        %44 = vector.multi_reduction <add>, %43, %cst_19 [0] : vector<16x128xf32> to vector<128xf32>
        %45 = vector.shape_cast %44 : vector<128xf32> to vector<1x128xf32>
        %46 = math.sqrt %45 : vector<1x128xf32>
        %cst_20 = arith.constant 1.000000e-15 : f32
        %47 = vector.broadcast %cst_20 : f32 to vector<1x128xf32>
        %48 = arith.maximumf %46, %47 : vector<1x128xf32>
        %cst_21 = arith.constant 1.000000e+00 : f32
        %49 = vector.broadcast %cst_21 : f32 to vector<1x128xf32>
        %50 = arith.divf %48, %49 : vector<1x128xf32>
        %cst_22 = arith.constant 1.500000e+01 : f32
        %51 = vector.broadcast %cst_22 : f32 to vector<1x128xf32>
        %52 = arith.minimumf %50, %51 : vector<1x128xf32>
        %53 = math.exp %52 : vector<1x128xf32>
        %cst_23 = arith.constant 0.000000e+00 : f32
        %54 = vector.broadcast %cst_23 : f32 to vector<1x128xf32>
        %55 = arith.subf %54, %52 : vector<1x128xf32>
        %56 = math.exp %55 : vector<1x128xf32>
        %57 = arith.subf %53, %56 : vector<1x128xf32>
        %cst_24 = arith.constant 5.000000e-01 : f32
        %58 = vector.broadcast %cst_24 : f32 to vector<1x128xf32>
        %59 = arith.mulf %58, %57 : vector<1x128xf32>
        %cst_25 = arith.constant 1.000000e+00 : f32
        %60 = vector.broadcast %cst_25 : f32 to vector<1x128xf32>
        %61 = arith.mulf %60, %59 : vector<1x128xf32>
        %62 = arith.divf %61, %48 : vector<1x128xf32>
        %63 = vector.broadcast %62 : vector<1x128xf32> to vector<16x128xf32>
        %64 = arith.mulf %63, %42 : vector<16x128xf32>
        %65 = arith.mulf %64, %64 : vector<16x128xf32>
        %cst_26 = arith.constant dense<0.000000e+00> : vector<128xf32>
        %66 = vector.multi_reduction <add>, %65, %cst_26 [0] : vector<16x128xf32> to vector<128xf32>
        %67 = vector.shape_cast %66 : vector<128xf32> to vector<1x128xf32>
        %cst_27 = arith.constant 1.000000e+00 : f32
        %68 = vector.broadcast %cst_27 : f32 to vector<1x128xf32>
        %69 = arith.addf %68, %67 : vector<1x128xf32>
        %cst_28 = arith.constant 4.000000e-03 : f32
        %70 = vector.broadcast %cst_28 : f32 to vector<1x128xf32>
        %71 = arith.maximumf %69, %70 : vector<1x128xf32>
        %72 = math.sqrt %71 : vector<1x128xf32>
        %73 = vector.broadcast %72 : vector<1x128xf32> to vector<16x128xf32>
        %74 = vector.broadcast %6 : vector<16x1xf32> to vector<16x128xf32>
        %75 = arith.mulf %73, %74 : vector<16x128xf32>
        %76 = arith.addf %64, %75 : vector<16x128xf32>
        %c0_29 = arith.constant 0 : index
        %c0_30 = arith.constant 0 : index
        %77 = vector.load %arg5[%c0_29, %c0_30] : memref<16x128xf32, #tpu.memory_space<vmem>>, vector<16x128xf32>
        tpu.vector_store %arg5[%c0_29, %c0_30], %76 {strides = array<i32>} : memref<16x128xf32, #tpu.memory_space<vmem>>, vector<16x128xf32>,
      } else {
      }
    } else {
    }
    return
  }
  func.func @transform_0(%arg0: i32, %arg1: i32, %arg2: i32) -> (i32, i32) {
    %c0_i32 = arith.constant 0 : i32
    %0 = arith.cmpi eq, %arg0, %c0_i32 : i32
    %c0_i32_0 = arith.constant 0 : i32
    %1 = arith.cmpi eq, %arg1, %c0_i32_0 : i32
    %2 = arith.andi %0, %1 : i1
    %c3_i32 = arith.constant 3 : i32
    %3 = arith.select %2, %arg2, %c3_i32 : i32
    %c0_i32_1 = arith.constant 0 : i32
    %c0_i32_2 = arith.constant 0 : i32
    return %c0_i32_1, %3 : i32, i32
  }
  func.func @transform_1(%arg0: i32, %arg1: i32, %arg2: i32) -> (i32, i32) {
    %c0_i32 = arith.constant 0 : i32
    return %arg1, %arg2 : i32, i32
  }
  func.func @transform_2(%arg0: i32, %arg1: i32, %arg2: i32) -> (i32, i32) {
    %c1_i32 = arith.constant 1 : i32
    %0 = arith.cmpi eq, %arg0, %c1_i32 : i32
    %c0_i32 = arith.constant 0 : i32
    %1 = arith.select %0, %arg1, %c0_i32 : i32
    %c0_i32_0 = arith.constant 0 : i32
    %c0_i32_1 = arith.constant 0 : i32
    return %c0_i32_0, %1 : i32, i32
  }
}

</mosaic_0001>

<bundles_post_ra>
// kernel: tpu_custom_call.1
= control target key start
LH: loop header
LB: loop body
LE: loop exit
PB: predicated region body
PF: predicated region fallthrough
CT: control target
= control target key end

     0   :  { %s1862_s0 = inlined_call_operand.hbm [shape: f32[16,512], index: 0, kind: input, shape index: {}]   ;;  %s1863_s1 = inlined_call_operand.hbm [shape: bf16[512,512], index: 1, kind: input, shape index: {}]   ;;  %s1864_s2 = inlined_call_operand.hbm [shape: f32[16,512], index: 2, kind: output, shape index: {}]  }
   0x1   :  { %1877 = sst [smem:[#allocation24_spill]] %s1864_s2 }
   0x2   :  { %7 = vsyncpa [#allocation7], 0 }
   0x3   :  { %9 = vsyncpa [#allocation7 + $0x1], 0 }
   0x4   :  { %10 = vsyncpa [#allocation10], 0 }
   0x5   :  { %12 = vsyncpa [#allocation10 + $0x1], 0 }
   0x6   :  { %13 = vsyncpa [#allocation8], 0 }
   0x7   :  { %15 = vsyncpa [#allocation8 + $0x1], 0  ;;  %s1467_s9 = smov 0   ;;  %s1469_s10 = smov 0  }
   0x8   :  { %s1471_s11 = smov 0   ;;  %s1473_s12 = smov 0  }
   0x9   :  { %s1475_s13 = smov 0   ;;  %s1477_s14 = smov 0  }
   0xa   :  { %s1479_s15 = smov 0   ;;  %s1481_s16 = smov 0  }
   0xb   :  { %s1483_s17 = smov 0   ;;  %s1485_s18 = smov 0  }
   0xc   :  { %s1487_s19 = smov 0   ;;  %s1489_s20 = smov 0  }
   0xd   :  { %s1491_s21 = smov 0   ;;  %s1493_s22 = smov 0  }
   0xe   :  { %s1495_s23 = smov 0   ;;  %s1497_s24 = smov 0  }
   0xf LB: > { %1878 = sst [smem:[#allocation15_spill]] %s1408_s18  ;;  %s1865_s25 = sadd.s32 4294967295, %s1432_s24   ;;  %s1432_s24 = sphi %s1497_s24, %s21_s24   ;;  %s1428_s23 = sphi %s1495_s23, %s1930_s23   ;;  %s1424_s22 = sphi %s1493_s22, %s1944_s22   ;;  %s1420_s21 = sphi %s1491_s21, %s1943_s21   ;;  %s1416_s20 = sphi %s1489_s20, %s1927_s20   ;;  %s1412_s19 = sphi %s1487_s19, %s1942_s19   ;;  %s1408_s18 = sphi %s1485_s18, %s1941_s18   ;;  %s1404_s17 = sphi %s1483_s17, %s1940_s17   ;;  %s1400_s16 = sphi %s1481_s16, %s1939_s16   ;;  %s1396_s15 = sphi %s1479_s15, %s1938_s15   ;;  %s1392_s14 = sphi %s1477_s14, %s1937_s14   ;;  %s1388_s13 = sphi %s1475_s13, %s1936_s13   ;;  %s1384_s12 = sphi %s1473_s12, %s1935_s12   ;;  %s1380_s11 = sphi %s1471_s11, %s1934_s11   ;;  %s1376_s10 = sphi %s1469_s10, %s1933_s10   ;;  %s1372_s9 = sphi %s1467_s9, %s1931_s9  }
  0x10   : > { %1879 = sst [smem:[#allocation16_spill]] %s1412_s19  ;;  %s33_s27 = sadd.s32 1, %s1420_s21 }
  0x11   : > { %1880 = sst [smem:[#allocation17_spill]] %s1416_s20  ;;  %s36_s28 = sadd.s32 1, %s1424_s22 }
  0x12   : > { %1881 = sst [smem:[#allocation18_spill]] %s1428_s23  ;;  %p34_p0 = scmp.ge.s32.totalorder %s33_s27, 4 }
  0x13   : > { %s40_s29 = sadd.s32 1, %s1428_s23  ;;  %p44_p1 = scmp.eq.s32.totalorder %s1428_s23, 0 }
  0x14   : > { %p45_p2 = scmp.eq.s32.totalorder %s1424_s22, 0  ;;  %s1946_s27 = smov (%p34_p0, %s33_s27), 0 }
  0x15   : > { %1882 = sst [smem:[#allocation19_spill]] %s1946_s27  ;;  %s1948_s28 = smov (!%p34_p0, %s36_s28), %s1424_s22 }
  0x16   : > { %p46_p3 = pnand %p45_p2, %p44_p1  ;;  %p38_p4 = scmp.ge.s32.totalorder %s1948_s28, 4 }
  0x17   : > { %p64_p5 = scmp.ne.s32.totalorder %s1404_s17, %s1400_s16  ;;  %p1874_p7 = scmp.eq.s32.totalorder %s1432_s24, 0 }
  0x18   : > { %s1561_s3 = scalar_select %p46_p3, 3, %s1420_s21 }
  0x19   : > { %s1950_s28 = smov (%p38_p4, %s1948_s28), 0  ;;  %s1952_s29 = smov (!%p38_p4, %s40_s29), %s1428_s23 }
  0x1a   : > { %1883 = sst [smem:[#allocation20_spill]] %s1950_s28  ;;  %p50_p6 = scmp.eq.s32.totalorder %s1950_s28, 0 }
  0x1b   : > { %p42_p8 = scmp.ge.s32.totalorder %s1952_s29, 2  ;;  %p70_p9 = scmp.ne.s32.totalorder %s1400_s16, %s1396_s15 }
  0x1c   : > { %p1572_p10 = por %p1874_p7, %p64_p5  ;;  %p1578_p11 = scmp.eq.s32.totalorder %s1865_s25, 0 }
  0x1d   : > { %s1954_s29 = smov (%p42_p8, %s1952_s29), 0  ;;  %s80_s7 = ssub.s32 %s1424_s22, %s1950_s28 }
  0x1e   : > { %1886 = sst [smem:[#allocation21_spill]] %s1954_s29  ;;  %p1586_p12 = por %p1578_p11, %p70_p9 }
  0x1f   : > { %p49_p13 = scmp.eq.s32.totalorder %s1954_s29, 0  ;;  %s81_s8 = ssub.s32 %s1420_s21, %s1946_s27 }
  0x20   : > { %s1595_s15 = sor.u32 %s81_s8, %s80_s7  ;;  %p108_p0 = scmp.eq.s32.totalorder %s1428_s23, 1 }
  0x21   : > { %p51_p1 = pnand %p50_p6, %p49_p13  ;;  %p110_p3 = scmp.eq.s32.totalorder %s1954_s29, 1 }
  0x22   : > { %s109_s26 = scalar_select %p108_p0, %s1424_s22, 0 }
  0x23   : > { %s861_s30 = scalar_select %p51_p1, 3, %s1946_s27 }
  0x24   : > { %s115_s25 = sadd.s32 1, %s1380_s11  ;;  %p125_p4 = scmp.ne.s32.totalorder %s1380_s11, %s1376_s10 }
  0x25   : > { %s54_s2 = ssub.s32 %s1561_s3, %s861_s30  ;;  %s1888_s7 = sadd.s32 4294967295, %s1432_s24  }
  0x26   : > { %p55_p5 = scmp.eq.s32.totalorder %s54_s2, 0  ;;  %p126_p8 = scmp.eq.s32.totalorder %s1888_s7, 31 }
  0x27   : > { %s111_s8 = scalar_select %p110_p3, %s1950_s28, 0 }
  0x28   : > { %s1889_s23 = sadd.s32 1, %s1404_s17  ;;  %p1616_p6 = por %p126_p8, %p125_p4 }
  0x29   : > { %s1614_s18 = scalar_select %p55_p5, %s1404_s17, %s1889_s23  }
  0x2a   : > { %s112_s19 = ssub.s32 %s109_s26, %s111_s8  ;;  %p131_p13 = scmp.ne.s32.totalorder %s1376_s10, %s1372_s9 }
  0x2b   : > { %1890 = sst [smem:[#allocation22_spill]] %s1614_s18  ;;  %p113_p9 = scmp.eq.s32.totalorder %s112_s19, 0 }
  0x2c   : > { %s1891_s27 = scalar_select %p1616_p6, 1, 0 }
  0x2d   : > { %s1893_s29 = sadd.s32 4294967294, %s1432_s24   ;;  %p1875_p3 = scmp.lt.s32.totalorder %s1432_s24, 32 }
  0x2e   : > { %1892 = sst [smem:[#allocation23_spill]] %s1891_s27  ;;  %p132_p0 = scmp.eq.s32.totalorder %s1893_s29, 31 }
  0x2f   : > { %s1625_s30 = scalar_select %p113_p9, %s1380_s11, %s115_s25  }
  0x30   : > { %p1627_p1 = por %p132_p0, %p131_p13  ;;  %s152_s7 = sand.u32 1, %s1404_s17  }
  0x31   : > { %s866_s23 = sshll.u32 %s1561_s3, 7  ;;  %s864_s28 = sshll.u32 %s152_s7, 4 }
  0x32   : > { %s1894_s2 = scalar_select %p1627_p1, 1, 0 }
  0x33   : > { %s166_s18 = scalar_lea.hbm %s1862_s0, %s866_s23  ;;  %s156_s20 = scalar_lea.vmem [#allocation6], %s864_s28 }
  0x34   : > { %s167_s27 = sshll.u32 %s156_s20, 4  ;;  %p1641_p4 = pnand %p1875_p3, %p1572_p10  ;;  %s168_s27 = int_to_ptr.vmem [resolvable:$true] %s167_s27 }
  0x35   : > { %p871_p5 = scmp.ge.s32.totalorder %s1432_s24, 1  ;;  %s153_s25 = scalar_lea.sflag [#allocation7], %s152_s7 }
  0x36   : > { %p1214_p8 = pneg %p1641_p4  ;;  %s1225_s29 = scalar_lea.vmem %s168_s27, 256 }
  0x37   : > { %p1226_p9 = scmp.ne.s32.totalorder %s168_s27, %s1225_s29  ;;  %s1434_s3 = smov [#allocation6]  }
  0x38   : > { %s1230_s23 = sshll.u32 %s1434_s3, 4  ;;  %s1231_s23 = int_to_ptr.vmem [resolvable:$false] %s1230_s23 }
  0x39   : > { %p1228_p13 = pnand %p1226_p9, %p1214_p8  ;;  %s1232_s20 = scalar_lea.vmem %s1231_s23, 512 }
  0x3a   : > { %p1233_p7 = scmp.lt.s32.totalorder %s168_s27, %s1231_s23  ;;  %p1234_p2 = scmp.lt.s32.totalorder %s1232_s20, %s1225_s29 }
  0x3b   : > { %p1229_p0 = pneg %p1228_p13 }
  0x3c   : > { %p1235_p10 = por %p1234_p2, %p1233_p7 }
  0x3e   : > { %p1236_p3 = pnand %p1235_p10, %p1229_p0 }
  0x40   : > { %1239 = shalt.err (!%p1236_p3)
}
  0x41   : > { %s1435_s28 = smov 512   ;;  %s1436_s4 = smov 128  }
  0x42   : > { %s1437_s7 = smov 8   ;;  %p198_p7 = scmp.lt.s32.totalorder %s1432_s24, 33 }
  0x43   : > { %1023 = dma.hbm_to_vmem [thread:$0]  (!%p1641_p4), %s166_s18, 256, %s168_s27, %s153_s25, %s1435_s28, %s1436_s4, %s1437_s7  }
  0x44   : > { %p1653_p2 = pnand %p871_p5, %p198_p7  ;;  %s85_s8 = sadd.s32 1, %s1392_s14 }
  0x45   : > { %p92_p3 = scmp.ne.s32.totalorder %s1392_s14, %s1388_s13  ;;  %p1897_p8 = scmp.eq.s32.totalorder %s1595_s15, 0 }
  0x46   : > { %p1898_p9 = scmp.eq.s32.totalorder %s1432_s24, 0  ;;  %p98_p0 = scmp.ne.s32.totalorder %s1388_s13, %s1384_s12 }
  0x47   : > { %s1663_s29 = scalar_select %p1897_p8, %s1392_s14, %s85_s8  }
  0x48   : > { %p94_p13 = por %p92_p3, %p1898_p9  ;;  %s177_s3 = sand.u32 1, %s1392_s14  }
  0x49   : > { %s929_s23 = sshll.u32 %s1424_s22, 6  ;;  %p1673_p10 = por %p98_p0, %p1578_p11 }
  0x4a   : > { %s867_s27 = sshll.u32 %s177_s3, 6  ;;  %s187_s19 = sadd.s32 %s1420_s21, %s929_s23 }
  0x4b   : > { %s870_s25 = sshll.u32 %s187_s19, 6  ;;  %s181_s15 = scalar_lea.vmem [#allocation9], %s867_s27 }
  0x4c   : > { %s189_s4 = scalar_lea.hbm %s1863_s1, %s870_s25  ;;  %s190_s7 = sshll.u32 %s181_s15, 4  ;;  %s191_s7 = int_to_ptr.vmem [resolvable:$true] %s190_s7 }
  0x4d   : > { %p1900_p4 = scmp.lt.s32.totalorder %s1432_s24, 32  ;;  %s178_s5 = scalar_lea.sflag [#allocation10], %s177_s3 }
  0x4e   : > { %s1253_s8 = scalar_lea.vmem %s191_s7, 1024  ;;  %s1438_s23 = smov [#allocation9]  }
  0x4f   : > { %p1683_p5 = pnand %p1900_p4, %p94_p13  ;;  %p1254_p7 = scmp.ne.s32.totalorder %s191_s7, %s1253_s8 }
  0x50   : > { %s1258_s19 = sshll.u32 %s1438_s23, 4  ;;  %s1259_s19 = int_to_ptr.vmem [resolvable:$false] %s1258_s19 }
  0x51   : > { %p1242_p11 = pneg %p1683_p5  ;;  %s1260_s25 = scalar_lea.vmem %s1259_s19, 2048 }
  0x52   : > { %p1261_p9 = scmp.lt.s32.totalorder %s191_s7, %s1259_s19  ;;  %p1262_p0 = scmp.lt.s32.totalorder %s1260_s25, %s1253_s8 }
  0x53   : > { %p1256_p3 = pnand %p1254_p7, %p1242_p11 }
  0x54   : > { %p1263_p1 = por %p1262_p0, %p1261_p9 }
  0x55   : > { %p1257_p8 = pneg %p1256_p3 }
  0x57   : > { %p1264_p6 = pnand %p1263_p1, %p1257_p8 }
  0x59   : > { %1267 = shalt.err (!%p1264_p6)
}
  0x5a   : > { %s1439_s27 = smov 256   ;;  %s1440_s20 = smov 64  }
  0x5b   : > { %s1441_s28 = smov 4   ;;  %202 = sbr.rel (%p1653_p2) target bundleno = 967 (0x3c7), region = 28 }
  0x5c   : > { %1026 = dma.hbm_to_vmem [thread:$0]  (!%p1683_p5), %s189_s4, 1024, %s191_s7, %s178_s5, %s1439_s27, %s1440_s20, %s1441_s28  }
  0x5d   : > { %s204_s3 = sand.u32 (!%p1653_p2), 1, %s1400_s16  }
  0x5e   : > { %s1694_s15 = sshll.u32 (!%p1653_p2), %s204_s3, 4  ;;  %s205_s23 = scalar_lea.sflag (!%p1653_p2), [#allocation7], %s204_s3 }
  0x5f   : > { %s208_s8 = scalar_lea.vmem (!%p1653_p2), [#allocation6], %s1694_s15 }
  0x60   : > { %1359 = dma.done.wait (%p1586_p12), %s205_s23, 256  }
  0x61   : > { %1361 = vsyncadd (%p1586_p12), %s205_s23, 4294967040  ;;  %s213_s12 = sand.u32 1, %s1388_s13  }
  0x62   : > { %s873_s4 = sshll.u32 %s213_s12, 6  ;;  %s214_s7 = scalar_lea.sflag [#allocation10], %s213_s12 }
  0x63   : > { %s1702_s26 = scalar_lea.vmem [#allocation9], %s873_s4 }
  0x64   : > { %1363 = dma.done.wait (%p1673_p10), %s214_s7, 1024  }
  0x65   : > { %1365 = vsyncadd (%p1673_p10), %s214_s7, 4294966272  ;;  %s1902_s5 = sld [smem:[#allocation17_spill]]  ;;  %s240_s19 = sand.u32 1, %s1376_s10   ;;  %v252_v0 = vlaneseq  ;;  %v1442_v2 = vmov 0.0  }
  0x66   : > { %s1903_s6 = sld [smem:[#allocation16_spill]]  ;;  %s874_s25 = sshll.u32 %s240_s19, 4 }
  0x67   : > { %v253_v1 = vshrl.u32 %v252_v0, 7  ;;  %s1721_s3 = scalar_lea.vmem [#allocation11], %s874_s25 }
  0x69   : > { %vm255_vm0 = vcmp.gt.s32.totalorder %v253_v1, 0 }
  0x6a   : > { %v1716_v3 = vsel %vm255_vm0, 1.0, %v1442_v2 }
  0x6b   : > { %p263_p12 = scmp.lt.s32.totalorder %s1902_s5, 0  ;;  %s264_s27 = ssub.s32 0, %s1902_s5  ;;  %v261_v4 = vsub.f32 1.0, %v1716_v3 }
  0x6c   : > { %s876_s20 = smin.u32 %s1902_s5, %s264_s27  ;;  %p270_p6 = scmp.eq.s32.totalorder %s1902_s5, 0 }
  0x6d   : > { %s266_s28 = sand.u32 1, %s876_s20   ;;  %p271_p1 = scmp.eq.s32.totalorder %s1903_s6, 0 }
  0x6e   : > { %s267_s18 = ssub.s32 0, %s266_s28 }
  0x6f   : > { %s1956_s18 = smov (!%p263_p12, %s267_s18), %s266_s28  ;;  %p272_p2 = pnand %p271_p1, %p270_p6 }
  0x70   : > { %s1904_s15 = sld [smem:[#allocation15_spill]] (!%p272_p2) }
  0x71   : > { %275 = sbr.rel (%p272_p2) target bundleno = 180 (0xb4), region = 40 }
  0x76   : > { %v276_v5 = vld [vmem:[%s208_s8] sm:$0xff]  ;;  %v277_v6 = vld [vmem:[%s208_s8 + $0x8] sm:$0xff]  ;;  %v314_v34 = vsub.s32 0, %v253_v1  ;;  %s932_s23 = sshll.u32 %s1904_s15, 3 }
  0x77   : > { %v278_v7 = vmul.f32 %v1716_v3, %v276_v5  ;;  %v281_v8 = vmul.f32 %v277_v6, %v277_v6  ;;  %v297_v9 = vmax.f32 %v276_v5, 1.004  ;;  %s328_s8 = scalar_lea.vmem [#allocation2], %s932_s23 }
  0x79   : > { %v280_v10 = vmul.f32 %v278_v7, %v278_v7  ;;  %v298_v11 = vmul.f32 %v297_v9, %v297_v9 }
  0x7b   : > { %v282_v12 = vadd.f32 %v281_v8, %v280_v10  ;;  %v877_v13 = vadd.f32 -1.0, %v298_v11 }
  0x7d   : > { %v283_v14 = vrot.slane %v282_v12, 4  ;;  %1176 = vrsqrt.f32 %v877_v13  ;;  %vm302_vm1 = vcmp.eq.f32.partialorder %v877_v13, inf  ;;  %v305_v22 = vand.u32 2147483648, %v877_v13 }
  0x7e   : > { %vm304_vm2 = vcmp.eq.f32.partialorder %v877_v13, 0.0 }
  0x7f   : > { %v284_v15 = vadd.f32 %v283_v14, %v282_v12 }
  0x81   : > { %v285_v16 = vrot.slane %v284_v15, 2 }
  0x83   : > { %v286_v17 = vadd.f32 %v285_v16, %v284_v15 }
  0x85   : > { %v287_v18 = vrot.slane %v286_v17, 1 }
  0x87   : > { %v288_v19 = vadd.f32 %v287_v18, %v286_v17 }
  0x89   : > { %1178 = vrsqrt.f32 %v288_v19  ;;  %vm291_vm3 = vcmp.eq.f32.partialorder %v288_v19, inf  ;;  %v294_v27 = vand.u32 2147483648, %v288_v19  ;;  %vm293_vm4 = vcmp.eq.f32.partialorder %v288_v19, 0.0 }
  0x8a   : > { %v1177_v20 = vpop.eup %1176 }
  0x8b   : > { %v301_v21 = vmul.f32 %v1177_v20, %v877_v13 }
  0x8d   : > { %v303_v23 = vsel %vm302_vm1, %v877_v13, %v301_v21 }
  0x8e   : > { %v306_v24 = vsel %vm304_vm2, %v305_v22, %v303_v23 }
  0x8f   : > { %v307_v25 = vadd.f32 %v306_v24, %v297_v9 }
  0x91   : > { %1180 = vlog2.f32 %v307_v25 }
  0x96   : > { %v1179_v26 = vpop.eup %1178 }
  0x97   : > { %v290_v28 = vmul.f32 %v1179_v26, %v288_v19 }
  0x99   : > { %v292_v29 = vsel %vm291_vm3, %v288_v19, %v290_v28 }
  0x9a   : > { %v295_v30 = vsel %vm293_vm4, %v294_v27, %v292_v29 }
  0x9b   : > { %v296_v31 = vmax.f32 %v295_v30, 1e-15 }
  0x9d   : > { %1182 = vrcp.f32 %v296_v31 }
  0x9e   : > { %v1181_v32 = vpop.eup %1180 }
  0x9f   : > { %v309_v33 = vmul.f32 0.6931472, %v1181_v32 }
  0xaa   : > { %v1183_v35 = vpop.eup %1182 }
  0xab   : > { %v311_v36 = vmul.f32 %v1183_v35, %v309_v33 }
  0xad   : > { %v315_v37 = vrot.slane %v311_v36, %v314_v34 }
  0xaf   : > { %v316_v38 = vmul.f32 %v315_v37, %v278_v7  ;;  %v317_v39 = vmul.f32 %v315_v37, %v277_v6 }
  0xb1   : > { %v944_v40 = vpack.c.bf16 %v317_v39, %v316_v38 }
  0xb3   : > { %945 = vst [vmem:[%s328_s8] sm:$0xff] %v944_v40  }
  0xb4 PF: > { %s1905_s12 = sld [smem:[#allocation15_spill]] }
  0xba   : > { %p882_p13 = scmp.ne.s32.totalorder %s1905_s12, 0 }
  0xbc   : > { %334 = sbr.rel (%p882_p13) target bundleno = 195 (0xc3), region = 44 }
  0xc1   : > { %v1443_v41 = vmov 0.0  }
  0xc2   : > { %335 = vst [vmem:[#allocation5] sm:$0xff] %v1443_v41  ;;  %336 = vst [vmem:[#allocation5 + $0x8] sm:$0xff] %v1443_v41 }
  0xc3 PF: > { %p883_p10 = scmp.ne.s32.totalorder %s1956_s18, 0 }
  0xc4   : > { %s1906_s4 = sld [smem:[#allocation15_spill]] (!%p883_p10) }
  0xc5   : > { %339 = sbr.rel (%p883_p10) target bundleno = 467 (0x1d3), region = 48 }
  0xca   : > { %v1184_v42 = vld [vmem:[%s1702_s26 + $0x38] sm:$0xff]   ;;  %v1444_v43 = vmov 0.0   ;;  %vm1445_vm5 = vmmov 0   ;;  %s933_s7 = sshll.u32 %s1906_s4, 3  ;;  %v1185_v44 = vld [vmem:[%s1702_s26 + $0x30] sm:$0xff]   ;;  %v1186_v45 = vld [vmem:[%s1702_s26 + $0x28] sm:$0xff]  }
  0xcb   : > { %974 = vmatprep.subr.bf16.mxu0 %v1444_v43  ;;  %990 = vmatprep.mubr.msk.bf16.mxu0 %vm1445_vm5, %v1444_v43  ;;  %s342_s5 = scalar_lea.vmem [#allocation2], %s933_s7  ;;  %v1187_v46 = vld [vmem:[%s1702_s26 + $0x20] sm:$0xff]   ;;  %v1188_v47 = vld [vmem:[%s1702_s26 + $0x18] sm:$0xff]   ;;  %v1189_v48 = vld [vmem:[%s1702_s26 + $0x10] sm:$0xff]  }
  0xcc   : > { %975 = vmatpush3.bf16.xpose.msra.mxu0 %v1184_v42  ;;  %v1190_v49 = vld [vmem:[%s1702_s26 + $0x8] sm:$0xff]   ;;  %v1191_v50 = vld [vmem:[%s1702_s26] sm:$0xff]   ;;  %v1192_v51 = vld [vmem:[%s342_s5] sm:$0xff]  }
  0xcd   : > { %976 = vmatprep.subr.bf16.mxu0 %v1444_v43  ;;  %v345_v52 = vld [vmem:[#allocation5] sm:$0xff]  ;;  %v346_v56 = vld [vmem:[#allocation5 + $0x8] sm:$0xff] }
  0xd4   : > { %977 = vmatpush3.bf16.xpose.msra.mxu0 %v1185_v44 }
  0xd5   : > { %978 = vmatprep.subr.bf16.mxu0 %v1444_v43 }
  0xdc   : > { %979 = vmatpush3.bf16.xpose.msra.mxu0 %v1186_v45 }
  0xdd   : > { %980 = vmatprep.subr.bf16.mxu0 %v1444_v43 }
  0xe4   : > { %981 = vmatpush3.bf16.xpose.msra.mxu0 %v1187_v46 }
  0xe5   : > { %982 = vmatprep.subr.bf16.mxu0 %v1444_v43 }
  0xec   : > { %983 = vmatpush3.bf16.xpose.msra.mxu0 %v1188_v47 }
  0xed   : > { %984 = vmatprep.subr.bf16.mxu0 %v1444_v43 }
  0xf4   : > { %985 = vmatpush3.bf16.xpose.msra.mxu0 %v1189_v48 }
  0xf5   : > { %986 = vmatprep.subr.bf16.mxu0 %v1444_v43 }
  0xfc   : > { %987 = vmatpush3.bf16.xpose.msra.mxu0 %v1190_v49 }
  0xfd   : > { %988 = vmatprep.subr.bf16.mxu0 %v1444_v43 }
 0x104   : > { %989 = vmatpush3.bf16.xpose.msra.mxu0 %v1191_v50 }
 0x10b   : > { %991 = vmatmul.mubr.bf16.vlgmr.msra.gmra.mxu0 %v1192_v51 }
 0x1cb   : > { %v451_v53 = vpop.f32.mrf.mxu0 }
 0x1cc   : > { %v458_v54 = vadd.f32 %v451_v53, %v345_v52 }
 0x1cd   : > { %v992_v55 = vpop.f32.mrf.mxu0 }
 0x1ce   : > { %460 = vst [vmem:[#allocation5] sm:$0xff] %v458_v54 }
 0x1cf   : > { %v454_v57 = vpop.f32.mrf.mxu0 }
 0x1d0   : > { %v459_v58 = vadd.f32 %v454_v57, %v346_v56 }
 0x1d1   : > { %v993_v59 = vpop.f32.mrf.mxu0 }
 0x1d2   : > { %461 = vst [vmem:[#allocation5 + $0x8] sm:$0xff] %v459_v58 }
 0x1d3 PF: > { %p895_p4 = scmp.eq.s32.totalorder %s1956_s18, 0 }
 0x1d4   : > { %s1907_s6 = sld [smem:[#allocation15_spill]] (!%p895_p4) }
 0x1d5   : > { %465 = sbr.rel (%p895_p4) target bundleno = 739 (0x2e3), region = 52 }
 0x1da   : > { %v1193_v60 = vld [vmem:[%s1702_s26 + $0x38] sm:$0xff]   ;;  %v1446_v61 = vmov 0.0   ;;  %vm1447_vm6 = vmmov 0   ;;  %s934_s25 = sshll.u32 %s1907_s6, 3  ;;  %v1194_v62 = vld [vmem:[%s1702_s26 + $0x30] sm:$0xff]   ;;  %v1195_v63 = vld [vmem:[%s1702_s26 + $0x28] sm:$0xff]  }
 0x1db   : > { %994 = vmatprep.subr.bf16.mxu0 %v1446_v61  ;;  %1010 = vmatprep.mubr.msk.bf16.mxu0 %vm1447_vm6, %v1446_v61  ;;  %s468_s27 = scalar_lea.vmem [#allocation3], %s934_s25  ;;  %v1196_v0 = vld [vmem:[%s1702_s26 + $0x20] sm:$0xff]   ;;  %v1197_v1 = vld [vmem:[%s1702_s26 + $0x18] sm:$0xff]   ;;  %v1198_v2 = vld [vmem:[%s1702_s26 + $0x10] sm:$0xff]  }
 0x1dc   : > { %995 = vmatpush3.bf16.xpose.msra.mxu0 %v1193_v60  ;;  %v1199_v5 = vld [vmem:[%s1702_s26 + $0x8] sm:$0xff]   ;;  %v1200_v6 = vld [vmem:[%s1702_s26] sm:$0xff]   ;;  %v1201_v7 = vld [vmem:[%s468_s27] sm:$0xff]  }
 0x1dd   : > { %996 = vmatprep.subr.bf16.mxu0 %v1446_v61  ;;  %v471_v8 = vld [vmem:[#allocation5] sm:$0xff]  ;;  %v472_v12 = vld [vmem:[#allocation5 + $0x8] sm:$0xff] }
 0x1e4   : > { %997 = vmatpush3.bf16.xpose.msra.mxu0 %v1194_v62 }
 0x1e5   : > { %998 = vmatprep.subr.bf16.mxu0 %v1446_v61 }
 0x1ec   : > { %999 = vmatpush3.bf16.xpose.msra.mxu0 %v1195_v63 }
 0x1ed   : > { %1000 = vmatprep.subr.bf16.mxu0 %v1446_v61 }
 0x1f4   : > { %1001 = vmatpush3.bf16.xpose.msra.mxu0 %v1196_v0 }
 0x1f5   : > { %1002 = vmatprep.subr.bf16.mxu0 %v1446_v61 }
 0x1fc   : > { %1003 = vmatpush3.bf16.xpose.msra.mxu0 %v1197_v1 }
 0x1fd   : > { %1004 = vmatprep.subr.bf16.mxu0 %v1446_v61 }
 0x204   : > { %1005 = vmatpush3.bf16.xpose.msra.mxu0 %v1198_v2 }
 0x205   : > { %1006 = vmatprep.subr.bf16.mxu0 %v1446_v61 }
 0x20c   : > { %1007 = vmatpush3.bf16.xpose.msra.mxu0 %v1199_v5 }
 0x20d   : > { %1008 = vmatprep.subr.bf16.mxu0 %v1446_v61 }
 0x214   : > { %1009 = vmatpush3.bf16.xpose.msra.mxu0 %v1200_v6 }
 0x21b   : > { %1011 = vmatmul.mubr.bf16.vlgmr.msra.gmra.mxu0 %v1201_v7 }
 0x2db   : > { %v577_v9 = vpop.f32.mrf.mxu0 }
 0x2dc   : > { %v584_v10 = vadd.f32 %v577_v9, %v471_v8 }
 0x2dd   : > { %v1012_v11 = vpop.f32.mrf.mxu0 }
 0x2de   : > { %586 = vst [vmem:[#allocation5] sm:$0xff] %v584_v10 }
 0x2df   : > { %v580_v13 = vpop.f32.mrf.mxu0 }
 0x2e0   : > { %v585_v14 = vadd.f32 %v580_v13, %v472_v12 }
 0x2e1   : > { %v1013_v15 = vpop.f32.mrf.mxu0 }
 0x2e2   : > { %587 = vst [vmem:[#allocation5 + $0x8] sm:$0xff] %v585_v14 }
 0x2e3 PF: > { %s1908_s20 = sld [smem:[#allocation15_spill]] }
 0x2e9   : > { %p907_p5 = scmp.ne.s32.totalorder %s1908_s20, 3 }
 0x2ea   : > { %s1909_s26 = sld [smem:[#allocation17_spill]] (!%p907_p5) }
 0x2eb   : > { %591 = sbr.rel (%p907_p5) target bundleno = 937 (0x3a9), region = 56 }
 0x2f0   : > { %v592_v16 = vld [vmem:[#allocation5] sm:$0xff]  ;;  %v593_v17 = vld [vmem:[#allocation5 + $0x8] sm:$0xff]  ;;  %p908_p11 = scmp.ge.s32.totalorder %s1909_s26, 1 }
 0x2f2   : > { %597 = sbr.rel (%p908_p11) target bundleno = 777 (0x309), region = 60 }
 0x2f7   : > { %600 = sbr.rel (%p883_p10) target bundleno = 768 (0x300), region = 64  ;;  %s1910_s28 = sld [smem:[#allocation16_spill]] (!%p883_p10) }
 0x2fc   : > { %v949_v18 = vpack.c.bf16 %v593_v17, %v592_v16 }
 0x2fd   : > { %s937_s15 = sshll.u32 %s1910_s28, 3 }
 0x2fe   : > { %s611_s23 = scalar_lea.vmem [#allocation3], %s937_s15 }
 0x2ff   : > { %950 = vst [vmem:[%s611_s23] sm:$0xff] %v949_v18  }
 0x300 PF: > { %616 = sbr.rel (%p895_p4) target bundleno = 777 (0x309), region = 68  ;;  %s1911_s8 = sld [smem:[#allocation16_spill]] (!%p895_p4) }
 0x305   : > { %v954_v19 = vpack.c.bf16 %v593_v17, %v592_v16 }
 0x306   : > { %s940_s12 = sshll.u32 %s1911_s8, 3 }
 0x307   : > { %s627_s4 = scalar_lea.vmem [#allocation2], %s940_s12 }
 0x308   : > { %955 = vst [vmem:[%s627_s4] sm:$0xff] %v954_v19  }
 0x309 PF: > { %s1912_s7 = sld [smem:[#allocation17_spill]] }
 0x30f   : > { %p919_p7 = scmp.ne.s32.totalorder %s1912_s7, 0 }
 0x310   : > { %s1913_s5 = sld [smem:[#allocation16_spill]] (!%p919_p7) }
 0x311   : > { %632 = sbr.rel (%p919_p7) target bundleno = 793 (0x319), region = 72 }
 0x316   : > { %s920_s6 = sshll.u32 %s1913_s5, 4 }
 0x317   : > { %s634_s25 = scalar_lea.vmem [#allocation4], %s920_s6 }
 0x318   : > { %635 = vst [vmem:[%s634_s25] sm:$0xff] %v592_v16  ;;  %636 = vst [vmem:[%s634_s25 + $0x8] sm:$0xff] %v593_v17 }
 0x319 PF: > { %s1914_s27 = sld [smem:[#allocation17_spill]] }
 0x31f   : > { %p921_p3 = scmp.le.s32.totalorder %s1914_s27, 0 }
 0x320   : > { %s1915_s18 = sld [smem:[#allocation16_spill]] (!%p921_p3) }
 0x321   : > { %640 = sbr.rel (%p921_p3) target bundleno = 812 (0x32c), region = 76 }
 0x326   : > { %s922_s20 = sshll.u32 %s1915_s18, 4 }
 0x327   : > { %s642_s26 = scalar_lea.vmem [#allocation4], %s922_s20 }
 0x328   : > { %v643_v20 = vld [vmem:[%s642_s26] sm:$0xff]  ;;  %v644_v21 = vld [vmem:[%s642_s26 + $0x8] sm:$0xff] }
 0x329   : > { %v645_v22 = vadd.f32 %v643_v20, %v592_v16  ;;  %v646_v23 = vadd.f32 %v644_v21, %v593_v17 }
 0x32b   : > { %647 = vst [vmem:[%s642_s26] sm:$0xff] %v645_v22  ;;  %648 = vst [vmem:[%s642_s26 + $0x8] sm:$0xff] %v646_v23 }
 0x32c PF: > { %s1916_s28 = sld [smem:[#allocation17_spill]] }
 0x332   : > { %p923_p8 = scmp.ne.s32.totalorder %s1916_s28, 1 }
 0x333   : > { %s1917_s15 = sld [smem:[#allocation16_spill]] (!%p923_p8) }
 0x334   : > { %652 = sbr.rel (%p923_p8) target bundleno = 937 (0x3a9), region = 80 }
 0x339   : > { %s924_s23 = sshll.u32 %s1917_s15, 4 }
 0x33a   : > { %s654_s8 = scalar_lea.vmem [#allocation4], %s924_s23 }
 0x33b   : > { %v655_v24 = vld [vmem:[%s654_s8] sm:$0xff]  ;;  %v656_v25 = vld [vmem:[%s654_s8 + $0x8] sm:$0xff] }
 0x33c   : > { %v657_v26 = vmul.f32 %v1716_v3, %v655_v24  ;;  %v660_v27 = vmul.f32 %v656_v25, %v656_v25 }
 0x33e   : > { %v659_v28 = vmul.f32 %v657_v26, %v657_v26 }
 0x340   : > { %v661_v29 = vadd.f32 %v660_v27, %v659_v28 }
 0x342   : > { %v662_v30 = vrot.slane %v661_v29, 4 }
 0x344   : > { %v663_v31 = vadd.f32 %v662_v30, %v661_v29 }
 0x346   : > { %v664_v32 = vrot.slane %v663_v31, 2 }
 0x348   : > { %v665_v33 = vadd.f32 %v664_v32, %v663_v31 }
 0x34a   : > { %v666_v34 = vrot.slane %v665_v33, 1 }
 0x34c   : > { %v667_v35 = vadd.f32 %v666_v34, %v665_v33 }
 0x34e   : > { %1202 = vrsqrt.f32 %v667_v35  ;;  %vm670_vm7 = vcmp.eq.f32.partialorder %v667_v35, inf  ;;  %v673_v37 = vand.u32 2147483648, %v667_v35  ;;  %vm672_vm8 = vcmp.eq.f32.partialorder %v667_v35, 0.0 }
 0x35b   : > { %v1203_v36 = vpop.eup %1202 }
 0x35c   : > { %v669_v38 = vmul.f32 %v1203_v36, %v667_v35 }
 0x35e   : > { %v671_v39 = vsel %vm670_vm7, %v667_v35, %v669_v38 }
 0x35f   : > { %v674_v40 = vsel %vm672_vm8, %v673_v37, %v671_v39 }
 0x360   : > { %v675_v41 = vmax.f32 %v674_v40, 1e-15 }
 0x362   : > { %v676_v42 = vmin.f32 %v675_v41, 15.0 }
 0x364   : > { %v677_v43 = vmul.f32 1.442695, %v676_v42  ;;  %v679_v44 = vsub.f32 0.0, %v676_v42 }
 0x366   : > { %1204 = vpow2.f32 %v677_v43  ;;  %v680_v45 = vmul.f32 1.442695, %v679_v44 }
 0x368   : > { %1206 = vpow2.f32 %v680_v45 }
 0x369   : > { %1208 = vrcp.f32 %v675_v41 }
 0x373   : > { %v1205_v46 = vpop.eup %1204 }
 0x375   : > { %v1207_v47 = vpop.eup %1206 }
 0x376   : > { %v682_v48 = vsub.f32 %v1205_v46, %v1207_v47  ;;  %v1209_v49 = vpop.eup %1208 }
 0x378   : > { %v683_v50 = vmul.f32 0.5, %v682_v48 }
 0x37a   : > { %v685_v51 = vmul.f32 %v1209_v49, %v683_v50 }
 0x37c   : > { %v686_v52 = vmul.f32 %v685_v51, %v657_v26  ;;  %v687_v53 = vmul.f32 %v685_v51, %v656_v25 }
 0x37e   : > { %v688_v54 = vmul.f32 %v686_v52, %v686_v52  ;;  %v689_v55 = vmul.f32 %v687_v53, %v687_v53 }
 0x380   : > { %v690_v56 = vadd.f32 %v689_v55, %v688_v54 }
 0x382   : > { %v691_v57 = vrot.slane %v690_v56, 4 }
 0x384   : > { %v692_v58 = vadd.f32 %v691_v57, %v690_v56 }
 0x386   : > { %v693_v59 = vrot.slane %v692_v58, 2 }
 0x388   : > { %v694_v60 = vadd.f32 %v693_v59, %v692_v58 }
 0x38a   : > { %v695_v61 = vrot.slane %v694_v60, 1 }
 0x38c   : > { %v696_v62 = vadd.f32 %v695_v61, %v694_v60 }
 0x38e   : > { %v697_v63 = vadd.f32 1.0, %v696_v62 }
 0x390   : > { %v698_v0 = vmax.f32 %v697_v63, 0.004 }
 0x392   : > { %1210 = vrsqrt.f32 %v698_v0  ;;  %vm701_vm9 = vcmp.eq.f32.partialorder %v698_v0, inf  ;;  %v704_v2 = vand.u32 2147483648, %v698_v0  ;;  %vm703_vm10 = vcmp.eq.f32.partialorder %v698_v0, 0.0 }
 0x39f   : > { %v1211_v1 = vpop.eup %1210 }
 0x3a0   : > { %v700_v5 = vmul.f32 %v1211_v1, %v698_v0 }
 0x3a2   : > { %v702_v6 = vsel %vm701_vm9, %v698_v0, %v700_v5 }
 0x3a3   : > { %v705_v7 = vsel %vm703_vm10, %v704_v2, %v702_v6 }
 0x3a4   : > { %v706_v8 = vmul.f32 %v705_v7, %v261_v4  ;;  %v707_v9 = vmul.f32 0.0, %v705_v7 }
 0x3a6   : > { %v708_v10 = vadd.f32 %v706_v8, %v686_v52  ;;  %v709_v11 = vadd.f32 %v707_v9, %v687_v53 }
 0x3a8   : > { %710 = vst [vmem:[%s1721_s3] sm:$0xff] %v708_v10  ;;  %711 = vst [vmem:[%s1721_s3 + $0x8] sm:$0xff] %v709_v11 }
 0x3a9 PF: > { %s1918_s12 = sld [smem:[#allocation17_spill]]  ;;  %s727_s5 = sshll.u32 %s1721_s3, 4  ;;  %s1772_s5 = int_to_ptr.vmem [resolvable:$true] %s727_s5 }
 0x3aa   : > { %s1919_s4 = sld [smem:[#allocation16_spill]]  ;;  %s1781_s28 = scalar_lea.sflag [#allocation8], %s240_s19 }
 0x3ab   : > { %s1920_s7 = sld [smem:[#allocation23_spill]]  ;;  %s1268_s15 = scalar_lea.vmem %s1772_s5, 256 }
 0x3ac   : > { %s1921_s18 = sld [smem:[#allocation24_spill]]  ;;  %p1269_p0 = scmp.ne.s32.totalorder %s1772_s5, %s1268_s15 }
 0x3ad   : > { %s1448_s3 = smov [#allocation11]  }
 0x3ae   : > { %s1272_s23 = sshll.u32 %s1448_s3, 4  ;;  %s1273_s23 = int_to_ptr.vmem [resolvable:$false] %s1272_s23 }
 0x3af   : > { %p720_p9 = scmp.eq.s32.totalorder %s1918_s12, 1  ;;  %s1274_s8 = scalar_lea.vmem %s1273_s23, 512 }
 0x3b0   : > { %p1275_p2 = scmp.lt.s32.totalorder %s1772_s5, %s1273_s23  ;;  %p1276_p13 = scmp.lt.s32.totalorder %s1274_s8, %s1268_s15 }
 0x3b1   : > { %s1958_s4 = smov (!%p720_p9, %s1919_s4), 0  ;;  %p1923_p12 = scmp.ne.s32.totalorder %s1920_s7, 0 }
 0x3b2   : > { %s926_s6 = sshll.u32 %s1958_s4, 7  ;;  %s1922_s26 = smov %s1921_s18 }
 0x3b3   : > { %s1777_s20 = scalar_lea.hbm %s1921_s18, %s926_s6  ;;  %p1270_p6 = pnand %p1269_p0, %p1923_p12 }
 0x3b4   : > { %p1277_p10 = por %p1276_p13, %p1275_p2 }
 0x3b5   : > { %p1271_p1 = pneg %p1270_p6 }
 0x3b7   : > { %p1278_p4 = pnand %p1277_p10, %p1271_p1 }
 0x3b9   : > { %1281 = shalt.err (!%p1278_p4)
}
 0x3ba   : > { %s1282_s19 = scalar_lea.hbm %s1777_s20, 256  ;;  %s1286_s6 = scalar_lea.hbm %s1922_s26, 1024 }
 0x3bb   : > { %p1283_p5 = scmp.ne.s32.totalorder %s1777_s20, %s1282_s19  ;;  %p1287_p3 = scmp.lt.s32.totalorder %s1777_s20, %s1922_s26 }
 0x3bc   : > { %p1288_p8 = scmp.lt.s32.totalorder %s1286_s6, %s1282_s19 }
 0x3bd   : > { %p1284_p11 = pnand %p1283_p5, %p1923_p12 }
 0x3be   : > { %p1289_p9 = por %p1288_p8, %p1287_p3 }
 0x3bf   : > { %p1285_p7 = pneg %p1284_p11 }
 0x3c1   : > { %p1290_p0 = pnand %p1289_p9, %p1285_p7 }
 0x3c3   : > { %1293 = shalt.err (!%p1290_p0)
}
 0x3c4   : > { %s1449_s18 = smov 128   ;;  %s1450_s15 = smov 512  }
 0x3c5   : > { %s1451_s3 = smov 8  }
 0x3c6   : > { %1018 = dma.vmem_to_hbm [thread:$0]  (%p1923_p12), %s1772_s5, 256, %s1777_s20, %s1781_s28, %s1449_s18, %s1450_s15, %s1451_s3  }
 0x3c7 PF: > { %p1032_p6 = scmp.ge.s32.totalorder %s1432_s24, 2  ;;  %s742_s23 = sand.u32 1, %s1372_s9  }
 0x3c8   : > { %p1924_p1 = scmp.ne.s32.totalorder %s1894_s2, 0  ;;  %s743_s8 = scalar_lea.sflag [#allocation8], %s742_s23 }
 0x3ca   : > { %p1028_p2 = pnand %p1032_p6, %p1924_p1 }
 0x3cc   : > { %p1029_p13 = pneg %p1028_p2 }
 0x3ce   : > { %1367 = dma.done.wait (%p1029_p13), %s743_s8, 256  }
 0x3cf   : > { %1369 = vsyncadd (%p1029_p13), %s743_s8, 4294967040  ;;  %s21_s24 = sadd.s32 1, %s1432_s24   ;;  %s1926_s2 = sld [smem:[#allocation22_spill]] }
 0x3d0   : > { %p1809_p10 = scmp.ge.s32.totalorder %s21_s24, 34   ;;  %s1927_s20 = sld [smem:[#allocation18_spill]] }
 0x3d1   : > { %s1928_s7 = sld [smem:[#allocation19_spill]]  ;;  %s1931_s9 = smov %s1376_s10 }
 0x3d2   : > { %s1929_s5 = sld [smem:[#allocation20_spill]]  ;;  %s1933_s10 = smov %s1380_s11 }
 0x3d3   : > { %s1930_s23 = sld [smem:[#allocation21_spill]]  ;;  %s1934_s11 = smov %s1625_s30 }
 0x3d4   : > { %s1935_s12 = smov %s1388_s13  ;;  %s1936_s13 = smov %s1392_s14 }
 0x3d5   : > { %s1937_s14 = smov %s1663_s29  ;;  %s1938_s15 = smov %s1400_s16 }
 0x3d6   : > { %s1939_s16 = smov %s1404_s17  ;;  %s1940_s17 = smov %s1926_s2 }
 0x3d7   : > { %s1941_s18 = smov %s1420_s21  ;;  %s1942_s19 = smov %s1424_s22 }
 0x3d8   : > { %s1943_s21 = smov %s1928_s7  ;;  %s1944_s22 = smov %s1929_s5 }
 0x3d9   :  { %20 = sbr.rel (!%p1809_p10) target bundleno = 15 (0xf), region = 138 }
 0x3de   :  { %748 = vsyncpa [#allocation7], 1 }
 0x3df   :  { %750 = vsyncpa [#allocation7 + $0x1], 1 }
 0x3e0   :  { %751 = vsyncpa [#allocation10], 1 }
 0x3e1   :  { %753 = vsyncpa [#allocation10 + $0x1], 1 }
 0x3e2   :  { %754 = vsyncpa [#allocation8], 1 }
 0x3e3   :  { %756 = vsyncpa [#allocation8 + $0x1], 1 }

</bundles_post_ra>
